<compile_context>
chip_gen: v7x
topology: tpu7x:2x2x1
jax: 0.10.0
libtpu: 0.0.40
codegen_flags: <defaults>
</compile_context>

<pallas_src>
import functools
import math

import jax
import jax.numpy as jnp
from jax.experimental import pallas as pl
from jax.experimental.pallas import tpu as pltpu


def _round_up(x, m):
    return (x + m - 1) // m * m


def _pool(x, mode):
    # x: (TB, S_in, F) block already loaded into vregs inside the kernel.
    if mode in ("CLS", "FLATTEN"):
        # Wrapper already restricted / reshaped the seq axis to length 1.
        return x[:, 0, :].astype(jnp.float32)
    if mode == "MEAN":
        return jnp.mean(x.astype(jnp.float32), axis=1)
    if mode == "SUM":
        return jnp.sum(x.astype(jnp.float32), axis=1)
    raise NotImplementedError("Pooling type is not supported.")


def dual_classifier_kernel(*refs, pooling_type, interaction, mm_dtype):
    if interaction == "NLI":
        (e1_ref, e2_ref, wa_ref, wb_ref, wc_ref,
         b1_ref, w2_ref, b2_ref, out_ref) = refs
    else:  # 'CAT'
        (e1_ref, e2_ref, wa_ref, wb_ref,
         b1_ref, w2_ref, b2_ref, out_ref) = refs
        wc_ref = None

    p1 = _pool(e1_ref[...], pooling_type)          # (TB, F) f32
    p2 = _pool(e2_ref[...], pooling_type)          # (TB, F) f32

    # Split-weight formulation of concat([p1,p2,(p1*p2),(p1-p2)]) @ W1.
    h = jnp.dot(p1.astype(mm_dtype), wa_ref[...],
                preferred_element_type=jnp.float32)
    h = h + jnp.dot(p2.astype(mm_dtype), wb_ref[...],
                    preferred_element_type=jnp.float32)
    if interaction == "NLI":
        h = h + jnp.dot((p1 * p2).astype(mm_dtype), wc_ref[...],
                        preferred_element_type=jnp.float32)

    h = h + b1_ref[...]                            # (1, Mp) broadcasts over TB
    h = jnp.where(h >= 0, h, 0.01 * h)             # LeakyReLU(0.01)

    # TODO(synk): training-mode dropout (pltpu.prng_random_bits mask) not applied;
    # inference-mode identity only.

    out = jnp.dot(h.astype(mm_dtype), w2_ref[...],
                  preferred_element_type=jnp.float32)
    out = out + b2_ref[...]                        # (1, Np)
    out_ref[...] = out.astype(out_ref.dtype)


def init_params(key, pooling_type, interaction, max_seq_len, encoder_dim,
                mlp_dim, num_class):
    """Deterministic parameter init mirroring reset_parameters() (torch layout)."""
    if interaction == "CAT":
        in1 = max_seq_len * encoder_dim * 2 if pooling_type == "FLATTEN" else encoder_dim * 2
    else:
        in1 = max_seq_len * encoder_dim * 4 if pooling_type == "FLATTEN" else encoder_dim * 4

    k1, k2 = jax.random.split(key)
    # kaiming_normal_(a=0, mode='fan_in', nonlinearity='leaky_relu'): std = sqrt(2)/sqrt(fan_in)
    std1 = math.sqrt(2.0) / math.sqrt(in1)
    w1 = std1 * jax.random.normal(k1, (mlp_dim, in1), jnp.float32)    # (out, in)
    b1 = jnp.zeros((mlp_dim,), jnp.float32)
    # xavier_normal_(gain=1.0): std = sqrt(2 / (fan_in + fan_out))
    std2 = math.sqrt(2.0 / (mlp_dim + num_class))
    w2 = std2 * jax.random.normal(k2, (num_class, mlp_dim), jnp.float32)
    b2 = jnp.zeros((num_class,), jnp.float32)
    return w1, b1, w2, b2


def prepare_params(w1, b1, w2, b2, *, pooling_type, interaction, max_seq_len,
                   encoder_dim, mm_dtype=jnp.bfloat16):
    """Fold / split / pad the torch-layout params for the fused kernel.

    Splits W1 into per-segment (F, mlp_dim) blocks and folds the NLI difference
    term so the kernel never builds the concatenated feature vector; pads the
    mlp and class dims to multiples of 128 for lane-dense MXU/N and output
    stores; casts matmul operands to `mm_dtype` (accumulation stays f32).
    """
    mlp_dim = w1.shape[0]
    num_class = w2.shape[0]
    F = max_seq_len * encoder_dim if pooling_type == "FLATTEN" else encoder_dim

    w1t = jnp.asarray(w1, jnp.float32).T        # (in1, mlp_dim)
    Mp = _round_up(mlp_dim, 128)
    Np = _round_up(num_class, 128)

    def pad_cols(x, cols):
        return jnp.pad(x, ((0, 0), (0, cols - x.shape[1])))

    if interaction == "NLI":
        w1a, w1b, w1c, w1d = (w1t[i * F:(i + 1) * F] for i in range(4))
        wa = w1a + w1d          # multiplies p1  (from p1 and +p1 of p1-p2)
        wb = w1b - w1d          # multiplies p2  (from p2 and -p2 of p1-p2)
        wc = w1c                # multiplies p1*p2
    else:  # 'CAT'
        wa = w1t[:F]
        wb = w1t[F:2 * F]
        wc = None

    w2p = jnp.pad(jnp.asarray(w2, jnp.float32).T, ((0, Mp - mlp_dim), (0, 0)))
    prepared = {
        "wa": pad_cols(wa, Mp).astype(mm_dtype),
        "wb": pad_cols(wb, Mp).astype(mm_dtype),
        "b1": pad_cols(jnp.asarray(b1, jnp.float32).reshape(1, -1), Mp),
        "w2": pad_cols(w2p, Np).astype(mm_dtype),
        "b2": pad_cols(jnp.asarray(b2, jnp.float32).reshape(1, -1), Np),
        "num_class": num_class,
        "mm_dtype": mm_dtype,
    }
    if wc is not None:
        prepared["wc"] = pad_cols(wc, Mp).astype(mm_dtype)
    return prepared


def _choose_batch_tile(batch, seq, feat, elem_bytes, weight_bytes,
                       vmem_budget=40 << 20):
    """Largest batch tile s.t. 2 inputs x 2 pipeline buffers + weights fit VMEM
    (budget kept below v7x's 64 MiB physical VMEM)."""
    per_row = 4 * seq * feat * elem_bytes
    avail = max(vmem_budget - weight_bytes, 1 << 20)
    tb = max(8, avail // max(per_row, 1))
    tb = min(tb, batch, 1024)
    if batch > 8:
        tb = max(8, (tb // 8) * 8)
    return int(tb)


def dual_classifier_forward(encoded_1, encoded_2, prepared, *, pooling_type,
                            interaction, batch_tile=None):
    B, S, D = encoded_1.shape

    # Pooling-aware input prep: never DMA data the kernel would discard.
    if pooling_type == "CLS":
        e1 = encoded_1[:, :1, :]
        e2 = encoded_2[:, :1, :]
    elif pooling_type == "FLATTEN":
        # TODO(synk): for very large S*D, stream the K dim with a reduction
        # grid axis + VMEM accumulator instead of holding W1 blocks resident.
        e1 = encoded_1.reshape(B, 1, S * D)
        e2 = encoded_2.reshape(B, 1, S * D)
    else:
        e1 = encoded_1
        e2 = encoded_2
    _, S_in, F = e1.shape

    wa, wb = prepared["wa"], prepared["wb"]
    wc = prepared.get("wc")
    b1, w2, b2 = prepared["b1"], prepared["w2"], prepared["b2"]
    num_class = prepared["num_class"]
    mm_dtype = prepared["mm_dtype"]
    Np = w2.shape[1]

    weight_arrays = [wa, wb, b1, w2, b2] + ([wc] if wc is not None else [])
    weight_bytes = sum(int(x.size) * x.dtype.itemsize for x in weight_arrays)

    if batch_tile is None:
        batch_tile = _choose_batch_tile(B, S_in, F, e1.dtype.itemsize,
                                        weight_bytes)
    TB = min(batch_tile, B)
    grid = (pl.cdiv(B, TB),)

    enc_spec = pl.BlockSpec((TB, S_in, F), lambda i: (i, 0, 0))

    def resident_spec(a):
        # Constant index_map -> block unchanged across grid steps -> single DMA.
        return pl.BlockSpec(a.shape, lambda i: (0, 0))

    in_specs = [enc_spec, enc_spec, resident_spec(wa), resident_spec(wb)]
    args = [e1, e2, wa, wb]
    if interaction == "NLI":
        in_specs.append(resident_spec(wc))
        args.append(wc)
    in_specs += [resident_spec(b1), resident_spec(w2), resident_spec(b2)]
    args += [b1, w2, b2]

    kernel = functools.partial(dual_classifier_kernel,
                               pooling_type=pooling_type,
                               interaction=interaction,
                               mm_dtype=mm_dtype)

    out_padded = pl.pallas_call(
        kernel,
        out_shape=jax.ShapeDtypeStruct((B, Np), jnp.float32),
        grid=grid,
        in_specs=in_specs,
        out_specs=pl.BlockSpec((TB, Np), lambda i: (i, 0)),
        compiler_params=pltpu.CompilerParams(
            dimension_semantics=("parallel",),
            vmem_limit_bytes=48 * 1024 * 1024,
        ),
    )(*args)

    return out_padded[:, :num_class]


def reference_forward(e1, e2, w1, b1, w2, b2, pooling_type, interaction):
    """Pure-JAX mirror of the PyTorch module (f32)."""
    def pool(x):
        if pooling_type == "CLS":
            return x[:, 0, :]
        if pooling_type == "MEAN":
            return jnp.mean(x, axis=1)
        if pooling_type == "SUM":
            return jnp.sum(x, axis=1)
        if pooling_type == "FLATTEN":
            return x.reshape(x.shape[0], -1)
        raise NotImplementedError("Pooling type is not supported.")

    p1, p2 = pool(e1), pool(e2)
    if interaction == "NLI":
        feats = jnp.concatenate([p1, p2, p1 * p2, p1 - p2], axis=-1)
    else:
        feats = jnp.concatenate([p1, p2], axis=-1)
    h = feats @ w1.T + b1
    h = jnp.where(h >= 0, h, 0.01 * h)
    return h @ w2.T + b2


if __name__ == "__main__":
    max_seq_len, encoder_dim, mlp_dim, num_class, batch = 8, 32, 64, 4, 2

    key = jax.random.PRNGKey(0)
    k_e1, k_e2, k_params = jax.random.split(key, 3)
    encoded_1 = jax.random.normal(k_e1, (batch, max_seq_len, encoder_dim),
                                  jnp.float32)
    encoded_2 = jax.random.normal(k_e2, (batch, max_seq_len, encoder_dim),
                                  jnp.float32)

    configs = [
        # (pooling_type, interaction, matmul dtype, tolerance)
        ("MEAN", "NLI", jnp.float32, 1e-4),
        ("MEAN", "NLI", jnp.bfloat16, 5e-2),
        ("CLS", "CAT", jnp.float32, 1e-4),
    ]

    for pooling_type, interaction, mm_dtype, tol in configs:
        w1, b1, w2, b2 = init_params(k_params, pooling_type, interaction,
                                     max_seq_len, encoder_dim, mlp_dim,
                                     num_class)
        prepared = prepare_params(w1, b1, w2, b2,
                                  pooling_type=pooling_type,
                                  interaction=interaction,
                                  max_seq_len=max_seq_len,
                                  encoder_dim=encoder_dim,
                                  mm_dtype=mm_dtype)
        out = dual_classifier_forward(encoded_1, encoded_2, prepared,
                                      pooling_type=pooling_type,
                                      interaction=interaction)
        out = jax.block_until_ready(out)

        ref = reference_forward(encoded_1, encoded_2, w1, b1, w2, b2,
                                pooling_type, interaction)
        assert out.shape == (batch, num_class), (out.shape, pooling_type)
        assert jnp.allclose(out, ref, atol=tol, rtol=tol), \
            (pooling_type, interaction, str(mm_dtype))

    print("KERNEL_OK")
</pallas_src>

<mosaic_0001>
module attributes {stable_mosaic.version = 11 : i64} {
  func.func @dual_classifier_kernel(%arg0: i32, %arg1: memref<2x8x32xf32, #tpu.memory_space<vmem>>, %arg2: memref<2x8x32xf32, #tpu.memory_space<vmem>>, %arg3: memref<32x128xf32, #tpu.memory_space<vmem>>, %arg4: memref<32x128xf32, #tpu.memory_space<vmem>>, %arg5: memref<32x128xf32, #tpu.memory_space<vmem>>, %arg6: memref<1x128xf32, #tpu.memory_space<vmem>>, %arg7: memref<128x128xf32, #tpu.memory_space<vmem>>, %arg8: memref<1x128xf32, #tpu.memory_space<vmem>>, %arg9: memref<2x128xf32, #tpu.memory_space<vmem>>) attributes {dimension_semantics = [#tpu.dimension_semantics<parallel>], iteration_bounds = array<i64: 1>, scalar_prefetch = 0 : i64, scratch_operands = 0 : i64, tpu.core_type = #tpu.core_type<tc>, window_params = [{transform_indices = @transform_0, window_bounds = array<i64: 2, 8, 32>}, {transform_indices = @transform_1, window_bounds = array<i64: 2, 8, 32>}, {pipeline_mode = #tpu.pipeline_mode<synchronous>, transform_indices = @transform_2, window_bounds = array<i64: 32, 128>}, {pipeline_mode = #tpu.pipeline_mode<synchronous>, transform_indices = @transform_3, window_bounds = array<i64: 32, 128>}, {pipeline_mode = #tpu.pipeline_mode<synchronous>, transform_indices = @transform_4, window_bounds = array<i64: 32, 128>}, {pipeline_mode = #tpu.pipeline_mode<synchronous>, transform_indices = @transform_5, window_bounds = array<i64: 1, 128>}, {pipeline_mode = #tpu.pipeline_mode<synchronous>, transform_indices = @transform_6, window_bounds = array<i64: 128, 128>}, {pipeline_mode = #tpu.pipeline_mode<synchronous>, transform_indices = @transform_7, window_bounds = array<i64: 1, 128>}, {transform_indices = @transform_8, window_bounds = array<i64: 2, 128>}]} {
    %c0 = arith.constant 0 : index
    %c0_0 = arith.constant 0 : index
    %c0_1 = arith.constant 0 : index
    %0 = vector.load %arg1[%c0, %c0_0, %c0_1] : memref<2x8x32xf32, #tpu.memory_space<vmem>>, vector<2x8x32xf32>
    %cst = arith.constant dense<0.000000e+00> : vector<2x32xf32>
    %1 = vector.multi_reduction <add>, %0, %cst [1] : vector<2x8x32xf32> to vector<2x32xf32>
    %cst_2 = arith.constant 8.000000e+00 : f32
    %2 = vector.broadcast %cst_2 : f32 to vector<2x32xf32>
    %3 = arith.divf %1, %2 : vector<2x32xf32>
    %c0_3 = arith.constant 0 : index
    %c0_4 = arith.constant 0 : index
    %c0_5 = arith.constant 0 : index
    %4 = vector.load %arg2[%c0_3, %c0_4, %c0_5] : memref<2x8x32xf32, #tpu.memory_space<vmem>>, vector<2x8x32xf32>
    %cst_6 = arith.constant dense<0.000000e+00> : vector<2x32xf32>
    %5 = vector.multi_reduction <add>, %4, %cst_6 [1] : vector<2x8x32xf32> to vector<2x32xf32>
    %cst_7 = arith.constant 8.000000e+00 : f32
    %6 = vector.broadcast %cst_7 : f32 to vector<2x32xf32>
    %7 = arith.divf %5, %6 : vector<2x32xf32>
    %c0_8 = arith.constant 0 : index
    %c0_9 = arith.constant 0 : index
    %8 = vector.load %arg3[%c0_8, %c0_9] : memref<32x128xf32, #tpu.memory_space<vmem>>, vector<32x128xf32>
    %cst_10 = arith.constant dense<0.000000e+00> : vector<2x128xf32>
    %9 = tpu.matmul %3, %8, %cst_10 {dimension_numbers = #tpu.dot_dimension_numbers<[1], [0], [0], [1], [0, 0, 1, 1], [], []>} : vector<2x32xf32>, vector<32x128xf32>, vector<2x128xf32> -> vector<2x128xf32>
    %c0_11 = arith.constant 0 : index
    %c0_12 = arith.constant 0 : index
    %10 = vector.load %arg4[%c0_11, %c0_12] : memref<32x128xf32, #tpu.memory_space<vmem>>, vector<32x128xf32>
    %cst_13 = arith.constant dense<0.000000e+00> : vector<2x128xf32>
    %11 = tpu.matmul %7, %10, %cst_13 {dimension_numbers = #tpu.dot_dimension_numbers<[1], [0], [0], [1], [0, 0, 1, 1], [], []>} : vector<2x32xf32>, vector<32x128xf32>, vector<2x128xf32> -> vector<2x128xf32>
    %12 = arith.addf %9, %11 : vector<2x128xf32>
    %13 = arith.mulf %3, %7 : vector<2x32xf32>
    %c0_14 = arith.constant 0 : index
    %c0_15 = arith.constant 0 : index
    %14 = vector.load %arg5[%c0_14, %c0_15] : memref<32x128xf32, #tpu.memory_space<vmem>>, vector<32x128xf32>
    %cst_16 = arith.constant dense<0.000000e+00> : vector<2x128xf32>
    %15 = tpu.matmul %13, %14, %cst_16 {dimension_numbers = #tpu.dot_dimension_numbers<[1], [0], [0], [1], [0, 0, 1, 1], [], []>} : vector<2x32xf32>, vector<32x128xf32>, vector<2x128xf32> -> vector<2x128xf32>
    %16 = arith.addf %12, %15 : vector<2x128xf32>
    %c0_17 = arith.constant 0 : index
    %c0_18 = arith.constant 0 : index
    %17 = vector.load %arg6[%c0_17, %c0_18] : memref<1x128xf32, #tpu.memory_space<vmem>>, vector<1x128xf32>
    %18 = vector.broadcast %17 : vector<1x128xf32> to vector<2x128xf32>
    %19 = arith.addf %16, %18 : vector<2x128xf32>
    %cst_19 = arith.constant 0.000000e+00 : f32
    %20 = vector.broadcast %cst_19 : f32 to vector<2x128xf32>
    %21 = arith.cmpf oge, %19, %20 : vector<2x128xf32>
    %cst_20 = arith.constant 0.00999999977 : f32
    %22 = vector.broadcast %cst_20 : f32 to vector<2x128xf32>
    %23 = arith.mulf %22, %19 : vector<2x128xf32>
    %24 = arith.select %21, %19, %23 : vector<2x128xi1>, vector<2x128xf32>
    %c0_21 = arith.constant 0 : index
    %c0_22 = arith.constant 0 : index
    %25 = vector.load %arg7[%c0_21, %c0_22] : memref<128x128xf32, #tpu.memory_space<vmem>>, vector<128x128xf32>
    %cst_23 = arith.constant dense<0.000000e+00> : vector<2x128xf32>
    %26 = tpu.matmul %24, %25, %cst_23 {dimension_numbers = #tpu.dot_dimension_numbers<[1], [0], [0], [1], [0, 0, 1, 1], [], []>} : vector<2x128xf32>, vector<128x128xf32>, vector<2x128xf32> -> vector<2x128xf32>
    %c0_24 = arith.constant 0 : index
    %c0_25 = arith.constant 0 : index
    %27 = vector.load %arg8[%c0_24, %c0_25] : memref<1x128xf32, #tpu.memory_space<vmem>>, vector<1x128xf32>
    %28 = vector.broadcast %27 : vector<1x128xf32> to vector<2x128xf32>
    %29 = arith.addf %26, %28 : vector<2x128xf32>
    %c0_26 = arith.constant 0 : index
    %c0_27 = arith.constant 0 : index
    %30 = vector.load %arg9[%c0_26, %c0_27] : memref<2x128xf32, #tpu.memory_space<vmem>>, vector<2x128xf32>
    tpu.vector_store %arg9[%c0_26, %c0_27], %29 {strides = array<i32>} : memref<2x128xf32, #tpu.memory_space<vmem>>, vector<2x128xf32>,
    return
  }
  func.func @transform_0(%arg0: i32) -> (i32, i32, i32) {
    %c0_i32 = arith.constant 0 : i32
    %c0_i32_0 = arith.constant 0 : i32
    %c0_i32_1 = arith.constant 0 : i32
    return %arg0, %c0_i32, %c0_i32_0 : i32, i32, i32
  }
  func.func @transform_1(%arg0: i32) -> (i32, i32, i32) {
    %c0_i32 = arith.constant 0 : i32
    %c0_i32_0 = arith.constant 0 : i32
    %c0_i32_1 = arith.constant 0 : i32
    return %arg0, %c0_i32, %c0_i32_0 : i32, i32, i32
  }
  func.func @transform_2(%arg0: i32) -> (i32, i32) {
    %c0_i32 = arith.constant 0 : i32
    %c0_i32_0 = arith.constant 0 : i32
    %c0_i32_1 = arith.constant 0 : i32
    return %c0_i32, %c0_i32_0 : i32, i32
  }
  func.func @transform_3(%arg0: i32) -> (i32, i32) {
    %c0_i32 = arith.constant 0 : i32
    %c0_i32_0 = arith.constant 0 : i32
    %c0_i32_1 = arith.constant 0 : i32
    return %c0_i32, %c0_i32_0 : i32, i32
  }
  func.func @transform_4(%arg0: i32) -> (i32, i32) {
    %c0_i32 = arith.constant 0 : i32
    %c0_i32_0 = arith.constant 0 : i32
    %c0_i32_1 = arith.constant 0 : i32
    return %c0_i32, %c0_i32_0 : i32, i32
  }
  func.func @transform_5(%arg0: i32) -> (i32, i32) {
    %c0_i32 = arith.constant 0 : i32
    %c0_i32_0 = arith.constant 0 : i32
    %c0_i32_1 = arith.constant 0 : i32
    return %c0_i32, %c0_i32_0 : i32, i32
  }
  func.func @transform_6(%arg0: i32) -> (i32, i32) {
    %c0_i32 = arith.constant 0 : i32
    %c0_i32_0 = arith.constant 0 : i32
    %c0_i32_1 = arith.constant 0 : i32
    return %c0_i32, %c0_i32_0 : i32, i32
  }
  func.func @transform_7(%arg0: i32) -> (i32, i32) {
    %c0_i32 = arith.constant 0 : i32
    %c0_i32_0 = arith.constant 0 : i32
    %c0_i32_1 = arith.constant 0 : i32
    return %c0_i32, %c0_i32_0 : i32, i32
  }
  func.func @transform_8(%arg0: i32) -> (i32, i32) {
    %c0_i32 = arith.constant 0 : i32
    %c0_i32_0 = arith.constant 0 : i32
    return %arg0, %c0_i32 : i32, i32
  }
}

</mosaic_0001>

<bundles_post_ra>
// kernel: tpu_custom_call.1
= control target key start
LH: loop header
LB: loop body
LE: loop exit
PB: predicated region body
PF: predicated region fallthrough
CT: control target
= control target key end

     0   :  { %13 = vsyncpa [#allocation3], 0  ;;  %s1055_s0 = inlined_call_operand.hbm [shape: f32[2,8,32], index: 0, kind: input, shape index: {}]   ;;  %s1056_s1 = inlined_call_operand.hbm [shape: f32[2,8,32], index: 1, kind: input, shape index: {}]   ;;  %s1057_s2 = inlined_call_operand.hbm [shape: f32[32,128], index: 2, kind: input, shape index: {}]   ;;  %s1058_s3 = inlined_call_operand.hbm [shape: f32[32,128], index: 3, kind: input, shape index: {}]   ;;  %s1059_s4 = inlined_call_operand.hbm [shape: f32[32,128], index: 4, kind: input, shape index: {}]   ;;  %s1060_s5 = inlined_call_operand.vmem [shape: f32[1,128], index: 5, kind: input, shape index: {}]   ;;  %s1061_s6 = inlined_call_operand.hbm [shape: f32[128,128], index: 6, kind: input, shape index: {}]   ;;  %s1062_s7 = inlined_call_operand.vmem [shape: f32[1,128], index: 7, kind: input, shape index: {}]   ;;  %s1063_s8 = inlined_call_operand.hbm [shape: f32[2,128], index: 8, kind: output, shape index: {}]  }
   0x1   :  { %14 = vsyncpa [#allocation6], 0 }
   0x2   :  { %15 = vsyncpa [#allocation9], 0 }
   0x3   :  { %16 = vsyncpa [#allocation12], 0 }
   0x4   :  { %17 = vsyncpa [#allocation4], 0  ;;  %s837_s27 = smov [#allocation5]   ;;  %s838_s29 = smov [#allocation8]  }
   0x5   :  { %s35_s28 = sshll.u32 %s837_s27, 4  ;;  %s59_s30 = sshll.u32 %s838_s29, 4  ;;  %s36_s28 = int_to_ptr.vmem [resolvable:$true] %s35_s28  ;;  %s894_s30 = int_to_ptr.vmem [resolvable:$true] %s59_s30 }
   0x6   :  { %s673_s11 = scalar_lea.hbm %s1056_s1, 256 }
   0x7   :  { %p674_p0 = scmp.ne.s32.totalorder %s1056_s1, %s673_s11  ;;  %p677_p1 = scmp.lt.u32.totalorder %s673_s11, %s1056_s1 }
   0x9   :  { %p679_p2 = pnand %p677_p1, %p674_p0 }
   0xb   :  { %682 = shalt.err (!%p679_p2)
}
   0xc   :  { %s683_s16 = scalar_lea.vmem %s36_s28, 256  ;;  %p688_p4 = scmp.lt.s32.totalorder %s36_s28, %s36_s28 }
   0xd   :  { %p684_p3 = scmp.ne.s32.totalorder %s36_s28, %s683_s16  ;;  %p689_p5 = scmp.lt.s32.totalorder %s683_s16, %s683_s16 }
   0xf   :  { %p690_p6 = por %p689_p5, %p688_p4 }
  0x11   :  { %p691_p7 = pnand %p690_p6, %p684_p3 }
  0x13   :  { %694 = shalt.err (!%p691_p7)
}
  0x14   :  { %s839_s17 = smov 128   ;;  %s840_s18 = smov 8  }
  0x15   :  { %41 = dma.hbm_to_vmem [thread:$0]  %s1056_s1, 256, %s36_s28, [#allocation6], %s839_s17, %s839_s17, %s840_s18  }
  0x16   :  { %s695_s23 = scalar_lea.hbm %s1058_s3, 512 }
  0x17   :  { %p696_p8 = scmp.ne.s32.totalorder %s1058_s3, %s695_s23  ;;  %p699_p9 = scmp.lt.u32.totalorder %s695_s23, %s1058_s3 }
  0x19   :  { %p701_p10 = pnand %p699_p9, %p696_p8 }
  0x1b   :  { %704 = shalt.err (!%p701_p10)
}
  0x1c   :  { %s705_s29 = scalar_lea.vmem %s894_s30, 512  ;;  %p710_p12 = scmp.lt.s32.totalorder %s894_s30, %s894_s30 }
  0x1d   :  { %p706_p11 = scmp.ne.s32.totalorder %s894_s30, %s705_s29  ;;  %p711_p13 = scmp.lt.s32.totalorder %s705_s29, %s705_s29 }
  0x1f   :  { %p712_p0 = por %p711_p13, %p710_p12 }
  0x21   :  { %p713_p1 = pnand %p712_p0, %p706_p11 }
  0x23   :  { %716 = shalt.err (!%p713_p1)
}
  0x24   :  { %65 = dma.hbm_to_vmem [thread:$0]  %s1058_s3, 512, %s894_s30, [#allocation9], %s839_s17, %s839_s17, %s840_s18  }
  0x25   :  { %s841_s9 = smov [#allocation2]   ;;  %s842_s11 = smov [#allocation7]  }
  0x26   :  { %s23_s10 = sshll.u32 %s841_s9, 4  ;;  %s47_s12 = sshll.u32 %s842_s11, 4  ;;  %s24_s10 = int_to_ptr.vmem [resolvable:$true] %s23_s10  ;;  %s931_s12 = int_to_ptr.vmem [resolvable:$true] %s47_s12 }
  0x27   :  { %s717_s15 = scalar_lea.hbm %s1055_s0, 256 }
  0x28   :  { %p718_p2 = scmp.ne.s32.totalorder %s1055_s0, %s717_s15  ;;  %p721_p3 = scmp.lt.u32.totalorder %s717_s15, %s1055_s0 }
  0x2a   :  { %p723_p4 = pnand %p721_p3, %p718_p2 }
  0x2c   :  { %726 = shalt.err (!%p723_p4)
}
  0x2d   :  { %s727_s3 = scalar_lea.vmem %s24_s10, 256  ;;  %p732_p6 = scmp.lt.s32.totalorder %s24_s10, %s24_s10 }
  0x2e   :  { %p728_p5 = scmp.ne.s32.totalorder %s24_s10, %s727_s3  ;;  %p733_p7 = scmp.lt.s32.totalorder %s727_s3, %s727_s3 }
  0x30   :  { %p734_p8 = por %p733_p7, %p732_p6 }
  0x32   :  { %p735_p9 = pnand %p734_p8, %p728_p5 }
  0x34   :  { %738 = shalt.err (!%p735_p9)
}
  0x35   :  { %29 = dma.hbm_to_vmem [thread:$0]  %s1055_s0, 256, %s24_s10, [#allocation3], %s839_s17, %s839_s17, %s840_s18  }
  0x36   :  { %s739_s25 = scalar_lea.hbm %s1057_s2, 512 }
  0x37   :  { %p740_p10 = scmp.ne.s32.totalorder %s1057_s2, %s739_s25  ;;  %p743_p11 = scmp.lt.u32.totalorder %s739_s25, %s1057_s2 }
  0x39   :  { %p745_p12 = pnand %p743_p11, %p740_p10 }
  0x3b   :  { %748 = shalt.err (!%p745_p12)
}
  0x3c   :  { %s749_s28 = scalar_lea.vmem %s931_s12, 512  ;;  %p754_p0 = scmp.lt.s32.totalorder %s931_s12, %s931_s12 }
  0x3d   :  { %p750_p13 = scmp.ne.s32.totalorder %s931_s12, %s749_s28  ;;  %p755_p1 = scmp.lt.s32.totalorder %s749_s28, %s749_s28 }
  0x3f   :  { %p756_p2 = por %p755_p1, %p754_p0 }
  0x41   :  { %p757_p3 = pnand %p756_p2, %p750_p13 }
  0x43   :  { %760 = shalt.err (!%p757_p3)
}
  0x44   :  { %53 = dma.hbm_to_vmem [thread:$0]  %s1057_s2, 512, %s931_s12, [#allocation6], %s839_s17, %s839_s17, %s840_s18  }
  0x45   :  { %s843_s10 = smov [#allocation10]   ;;  %s844_s13 = smov [#allocation11]  }
  0x46   :  { %s71_s11 = sshll.u32 %s843_s10, 4  ;;  %s85_s14 = sshll.u32 %s844_s13, 4  ;;  %s72_s11 = int_to_ptr.vmem [resolvable:$true] %s71_s11  ;;  %s968_s14 = int_to_ptr.vmem [resolvable:$true] %s85_s14 }
  0x47   :  { %s761_s19 = scalar_lea.hbm %s1059_s4, 512 }
  0x48   :  { %p762_p4 = scmp.ne.s32.totalorder %s1059_s4, %s761_s19  ;;  %p765_p5 = scmp.lt.u32.totalorder %s761_s19, %s1059_s4 }
  0x4a   :  { %p767_p6 = pnand %p765_p5, %p762_p4 }
  0x4c   :  { %770 = shalt.err (!%p767_p6)
}
  0x4d   :  { %s771_s2 = scalar_lea.vmem %s72_s11, 512  ;;  %p776_p8 = scmp.lt.s32.totalorder %s72_s11, %s72_s11 }
  0x4e   :  { %p772_p7 = scmp.ne.s32.totalorder %s72_s11, %s771_s2  ;;  %p777_p9 = scmp.lt.s32.totalorder %s771_s2, %s771_s2 }
  0x50   :  { %p778_p10 = por %p777_p9, %p776_p8 }
  0x52   :  { %p779_p11 = pnand %p778_p10, %p772_p7 }
  0x54   :  { %782 = shalt.err (!%p779_p11)
}
  0x55   :  { %77 = dma.hbm_to_vmem [thread:$0]  %s1059_s4, 512, %s72_s11, [#allocation9], %s839_s17, %s839_s17, %s840_s18  }
  0x56   :  { %s783_s25 = scalar_lea.hbm %s1061_s6, 2048 }
  0x57   :  { %p784_p12 = scmp.ne.s32.totalorder %s1061_s6, %s783_s25  ;;  %p787_p13 = scmp.lt.u32.totalorder %s783_s25, %s1061_s6 }
  0x59   :  { %p789_p0 = pnand %p787_p13, %p784_p12 }
  0x5b   :  { %792 = shalt.err (!%p789_p0)
}
  0x5c   :  { %s793_s28 = scalar_lea.vmem %s968_s14, 2048  ;;  %p798_p2 = scmp.lt.s32.totalorder %s968_s14, %s968_s14 }
  0x5d   :  { %p794_p1 = scmp.ne.s32.totalorder %s968_s14, %s793_s28  ;;  %p799_p3 = scmp.lt.s32.totalorder %s793_s28, %s793_s28 }
  0x5f   :  { %p800_p4 = por %p799_p3, %p798_p2 }
  0x61   :  { %p801_p5 = pnand %p800_p4, %p794_p1 }
  0x63   :  { %804 = shalt.err (!%p801_p5)
}
  0x64   :  { %91 = dma.hbm_to_vmem [thread:$0]  %s1061_s6, 2048, %s968_s14, [#allocation12], %s839_s17, %s839_s17, %s840_s18  }
  0x65   :  { %827 = dma.done.wait [#allocation3], 256  }
  0x66   :  { %828 = vsyncadd [#allocation3], 4294967040 }
  0x67   :  { %829 = dma.done.wait [#allocation6], 768  }
  0x68   :  { %830 = vsyncadd [#allocation6], 4294966528 }
  0x69   :  { %831 = dma.done.wait [#allocation9], 1024  }
  0x6a   :  { %832 = vsyncadd [#allocation9], 4294966272 }
  0x6b   :  { %833 = dma.done.wait [#allocation12], 2048  }
  0x6c   :  { %834 = vsyncadd [#allocation12], 4294965248  ;;  %v845_v0 = vmov 0.0|0.0   ;;  %vm846_vm0 = vmmov 0   ;;  %v847_v1 = vmov 0.0   ;;  %v154_v2 = vld [vmem:[#allocation8] sm:$0xff] }
  0x6d   :  { %619 = vmatprep.subr.bf16.mxu0 %v845_v0  ;;  %559 = vmatprep.mubr.msk.f32.mxu0 %vm846_vm0, %v847_v1  ;;  %v155_v3 = vld [vmem:[#allocation8 + $0x8] sm:$0xff]  ;;  %v156_v4 = vld [vmem:[#allocation8 + $0x10] sm:$0xff]  ;;  %vm114_vm1 = vcmask 261120   ;;  %v157_v6 = vld [vmem:[#allocation8 + $0x18] sm:$0xff]  ;;  %vm160_vm2 = vcmask 1041409   ;;  %s848_s10 = smov [#allocation13]  }
  0x6e   :  { %637 = vmatprep.subr.bf16.mxu1 %v845_v0  ;;  %616 = vmatprep.mubr.msk.f32.mxu1 %vm846_vm0, %v847_v1  ;;  %v620_v5 = vpack.c.bf16 %v155_v3, %v154_v2  ;;  %v112_v7 = vld [vmem:[#allocation2] sm:$0xff]  ;;  %v113_v8 = vld [vmem:[#allocation2 + $0x8] sm:$0xff]  ;;  %v623_v9 = vpack.c.bf16 %v157_v6, %v156_v4  ;;  %v132_v12 = vld [vmem:[#allocation5] sm:$0xff]  ;;  %s502_s11 = sshll.u32 %s848_s10, 4  ;;  %s503_s11 = int_to_ptr.vmem [resolvable:$true] %s502_s11 }
  0x6f   :  { %v115_v10 = vsel %vm114_vm1, %v112_v7, 0.0  ;;  %v122_v11 = vsel %vm114_vm1, %v113_v8, 0.0  ;;  %v133_v13 = vld [vmem:[#allocation5 + $0x8] sm:$0xff]  ;;  %v134_v16 = vsel %vm114_vm1, %v132_v12, 0.0  ;;  %v402_v22 = vld [vmem:[#allocation11] sm:$0xff]  ;;  %v403_v25 = vld [vmem:[#allocation11 + $0x8] sm:$0xff]  ;;  %p810_p7 = scmp.lt.s32.totalorder %s503_s11, %s503_s11 }
  0x70   :  { %621 = vmatpush3.bf16.msra.mxu0 %v620_v5  ;;  %v116_v14 = vrot.slane %v115_v10, 4  ;;  %v123_v15 = vrot.slane %v122_v11, 4  ;;  %v141_v17 = vsel %vm114_vm1, %v133_v13, 0.0  ;;  %v135_v18 = vrot.slane %v134_v16, 4  ;;  %v404_v26 = vld [vmem:[#allocation11 + $0x10] sm:$0xff]  ;;  %v405_v27 = vld [vmem:[#allocation11 + $0x18] sm:$0xff] }
  0x71   :  { %622 = vmatprep.subr.bf16.mxu0 %v845_v0  ;;  %v142_v19 = vrot.slane %v141_v17, 4  ;;  %v638_v30 = vpack.c.bf16 %v403_v25, %v402_v22  ;;  %v641_v35 = vpack.c.bf16 %v405_v27, %v404_v26  ;;  %v150_v42 = vld [vmem:[#allocation7] sm:$0xff]  ;;  %v151_v43 = vld [vmem:[#allocation7 + $0x8] sm:$0xff]  ;;  %v152_v51 = vld [vmem:[#allocation7 + $0x10] sm:$0xff]  ;;  %s805_s13 = scalar_lea.vmem %s503_s11, 32 }
  0x72   :  { %v117_v20 = vadd.f32 %v116_v14, %v115_v10  ;;  %v124_v21 = vadd.f32 %v123_v15, %v122_v11  ;;  %v136_v23 = vadd.f32 %v135_v18, %v134_v16  ;;  %v626_v46 = vpack.c.bf16 %v151_v43, %v150_v42  ;;  %v153_v52 = vld [vmem:[#allocation7 + $0x18] sm:$0xff]  ;;  %v311_v57 = vld [vmem:[#allocation10] sm:$0xff]  ;;  %v312_v58 = vld [vmem:[#allocation10 + $0x8] sm:$0xff]  ;;  %p806_p6 = scmp.ne.s32.totalorder %s503_s11, %s805_s13  ;;  %p811_p8 = scmp.lt.s32.totalorder %s805_s13, %s805_s13 }
  0x73   :  { %v143_v24 = vadd.f32 %v142_v19, %v141_v17  ;;  %639 = vmatpush3.bf16.msra.mxu1 %v638_v30  ;;  %v629_v56 = vpack.c.bf16 %v153_v52, %v152_v51  ;;  %v632_v60 = vpack.c.bf16 %v312_v58, %v311_v57  ;;  %v313_v61 = vld [vmem:[#allocation10 + $0x10] sm:$0xff]  ;;  %v314_v62 = vld [vmem:[#allocation10 + $0x18] sm:$0xff]  ;;  %v406_v5 = vld [vmem:[#allocation11 + $0x20] sm:$0xff] }
  0x74   :  { %624 = vmatpush3.bf16.msra.mxu0 %v623_v9  ;;  %v118_v28 = vrot.slane %v117_v20, 2  ;;  %v125_v29 = vrot.slane %v124_v21, 2  ;;  %v137_v31 = vrot.slane %v136_v23, 2  ;;  %640 = vmatprep.subr.bf16.mxu1 %v845_v0  ;;  %v635_v3 = vpack.c.bf16 %v314_v62, %v313_v61  ;;  %v407_v6 = vld [vmem:[#allocation11 + $0x28] sm:$0xff]  ;;  %v408_v8 = vld [vmem:[#allocation11 + $0x30] sm:$0xff]  ;;  %v409_v9 = vld [vmem:[#allocation11 + $0x38] sm:$0xff]  ;;  %p812_p9 = por %p811_p8, %p810_p7 }
  0x75   :  { %625 = vmatprep.subr.bf16.mxu0 %v845_v0  ;;  %v144_v32 = vrot.slane %v143_v24, 2  ;;  %v644_v7 = vpack.c.bf16 %v407_v6, %v406_v5  ;;  %v647_v10 = vpack.c.bf16 %v409_v9, %v408_v8  ;;  %v411_v11 = vld [vmem:[#allocation11 + $0x48] sm:$0xff]  ;;  %v412_v13 = vld [vmem:[#allocation11 + $0x50] sm:$0xff]  ;;  %v413_v14 = vld [vmem:[#allocation11 + $0x58] sm:$0xff] }
  0x76   :  { %v119_v33 = vadd.f32 %v118_v28, %v117_v20  ;;  %v126_v34 = vadd.f32 %v125_v29, %v124_v21  ;;  %v138_v36 = vadd.f32 %v137_v31, %v136_v23  ;;  %v653_v15 = vpack.c.bf16 %v413_v14, %v412_v13  ;;  %v414_v16 = vld [vmem:[#allocation11 + $0x60] sm:$0xff]  ;;  %v415_v17 = vld [vmem:[#allocation11 + $0x68] sm:$0xff]  ;;  %v416_v19 = vld [vmem:[#allocation11 + $0x70] sm:$0xff]  ;;  %p813_p10 = pnand %p812_p9, %p806_p6 }
  0x77   :  { %v145_v37 = vadd.f32 %v144_v32, %v143_v24  ;;  %642 = vmatpush3.bf16.msra.mxu1 %v641_v35  ;;  %v656_v18 = vpack.c.bf16 %v415_v17, %v414_v16  ;;  %v417_v20 = vld [vmem:[#allocation11 + $0x78] sm:$0xff]  ;;  %v517_v28 = vld [vmem:[%s1060_s5] ss:$0 sm:$0xff] }
  0x78   :  { %v120_v38 = vrot.slane %v119_v33, 1  ;;  %v127_v39 = vrot.slane %v126_v34, 1  ;;  %v139_v40 = vrot.slane %v138_v36, 1  ;;  %643 = vmatprep.subr.bf16.mxu1 %v845_v0  ;;  %v659_v21 = vpack.c.bf16 %v417_v20, %v416_v19 }
  0x79   :  { %v146_v41 = vrot.slane %v145_v37, 1 }
  0x7a   :  { %v140_v44 = vadd.f32 %v139_v40, %v138_v36  ;;  %v121_v47 = vadd.f32 %v120_v38, %v119_v33  ;;  %v128_v48 = vadd.f32 %v127_v39, %v126_v34  ;;  %v518_v33 = vld [vmem:[%s1062_s7] ss:$0 sm:$0xff] }
  0x7b   :  { %v147_v45 = vadd.f32 %v146_v41, %v145_v37  ;;  %645 = vmatpush3.bf16.msra.mxu1 %v644_v7 }
  0x7c   :  { %v148_v49 = vmul.f32 0.125, %v140_v44  ;;  %v130_v54 = vmul.f32 0.125, %v121_v47  ;;  %v131_v55 = vmul.f32 0.125, %v128_v48  ;;  %646 = vmatprep.subr.bf16.mxu1 %v845_v0 }
  0x7d   :  { %v149_v50 = vmul.f32 0.125, %v147_v45 }
  0x7e   :  { %v236_v59 = vsel %vm160_vm2, %v131_v55, %v130_v54  ;;  %v309_v63 = vmul.f32 %v148_v49, %v130_v54 }
  0x7f   :  { %v161_v53 = vsel %vm160_vm2, %v149_v50, %v148_v49  ;;  %v310_v2 = vmul.f32 %v149_v50, %v131_v55  ;;  %648 = vmatpush3.bf16.msra.mxu1 %v647_v10 }
  0x80   :  { %560 = vmatmul.mubr.msk.f32.vlgmr.msra.gmra.mrb[0].mxu0 %vm114_vm1, %v161_v53  ;;  %649 = vmatprep.subr.bf16.mxu1 %v845_v0 }
  0x81   :  { %627 = vmatpush3.bf16.msra.mxu0 %v626_v46  ;;  %570 = vmatprep.mubr.msk.f32.mxu0 %vm846_vm0, %v847_v1  ;;  %v317_v4 = vsel %vm160_vm2, %v310_v2, %v309_v63 }
  0x82   :  { %628 = vmatprep.subr.bf16.mxu0 %v845_v0 }
  0x85   :  { %630 = vmatpush3.bf16.msra.mxu0 %v629_v56 }
  0x86   :  { %631 = vmatprep.subr.bf16.mxu0 %v845_v0 }
  0x88   :  { %571 = vmatmul.mubr.msk.f32.vlgmr.msra.gmra.mrb[2].mxu0 %vm114_vm1, %v236_v59 }
  0x89   :  { %633 = vmatpush3.bf16.msra.mxu0 %v632_v60  ;;  %581 = vmatprep.mubr.msk.f32.mxu0 %vm846_vm0, %v847_v1  ;;  %v410_v1 = vld [vmem:[#allocation11 + $0x40] sm:$0xff] }
  0x8a   :  { %634 = vmatprep.subr.bf16.mxu0 %v845_v0  ;;  %v650_v12 = vpack.c.bf16 %v411_v11, %v410_v1 }
  0x8c   :  { %651 = vmatpush3.bf16.msra.mxu1 %v650_v12 }
  0x8d   :  { %636 = vmatpush3.bf16.msra.mxu0 %v635_v3  ;;  %652 = vmatprep.subr.bf16.mxu1 %v845_v0 }
  0x90   :  { %582 = vmatmul.mubr.msk.f32.vlgmr.msra.gmra.mrb[4].mxu0 %vm114_vm1, %v317_v4  ;;  %654 = vmatpush3.bf16.msra.mxu1 %v653_v15 }
  0x91   :  { %655 = vmatprep.subr.bf16.mxu1 %v845_v0 }
  0x94   :  { %657 = vmatpush3.bf16.msra.mxu1 %v656_v18 }
  0x95   :  { %658 = vmatprep.subr.bf16.mxu1 %v845_v0 }
  0x98   :  { %660 = vmatpush3.bf16.msra.mxu1 %v659_v21 }
 0x153   :  { %v230_v22 = vpop.f32.mrb[0].mxu0 }
 0x154   :  { %v561_v23 = vpop.f32.mrb[1].mxu0 }
 0x15b   :  { %v305_v24 = vpop.f32.mrb[2].mxu0 }
 0x15c   :  { %v306_v25 = vadd.f32 %v305_v24, %v230_v22  ;;  %v572_v26 = vpop.f32.mrb[3].mxu0 }
 0x163   :  { %v386_v27 = vpop.f32.mrb[4].mxu0 }
 0x164   :  { %v390_v29 = vadd.f32 %v386_v27, %v306_v25  ;;  %v583_v30 = vpop.f32.mrb[5].mxu0 }
 0x166   :  { %v398_v31 = vadd.f32 %v517_v28, %v390_v29 }
 0x168   :  { %vm399_vm3 = vcmp.ge.f32.partialorder %v398_v31, 0.0  ;;  %v400_v32 = vmul.f32 0.01, %v398_v31 }
 0x16a   :  { %v401_v0 = vsel %vm399_vm3, %v398_v31, %v400_v32 }
 0x16b   :  { %617 = vmatmul.mubr.f32.vlgmr.msra.gmra.mrb[0].mxu1 %v401_v0 }
 0x23e   :  { %v491_v34 = vpop.f32.mrb[0].mxu1 }
 0x23f   :  { %v492_v35 = vadd.f32 %v518_v33, %v491_v34  ;;  %v618_v36 = vpop.f32.mrb[1].mxu1 }
 0x241   :  { %495 = vst [vmem:[#allocation13] sm:$0x3] %v492_v35 }
 0x242   :  { %816 = shalt.err (!%p813_p10)
}
 0x243   :  { %s817_s15 = scalar_lea.hbm %s1063_s8, 32 }
 0x244   :  { %p818_p11 = scmp.ne.s32.totalorder %s1063_s8, %s817_s15  ;;  %p821_p12 = scmp.lt.u32.totalorder %s817_s15, %s1063_s8 }
 0x246   :  { %p823_p13 = pnand %p821_p12, %p818_p11 }
 0x248   :  { %826 = shalt.err (!%p823_p13)
}
 0x249   :  { %505 = dma.vmem_to_hbm [thread:$0]  %s503_s11, 32, %s1063_s8, [#allocation4]  }
 0x24a   :  { %835 = dma.done.wait [#allocation4], 32  }
 0x24b   :  { %836 = vsyncadd [#allocation4], 4294967264 }
 0x24c   :  { %509 = vsyncpa [#allocation3], 1 }
 0x24d   :  { %510 = vsyncpa [#allocation6], 1 }
 0x24e   :  { %511 = vsyncpa [#allocation9], 1 }
 0x24f   :  { %512 = vsyncpa [#allocation12], 1 }
 0x250   :  { %513 = vsyncpa [#allocation4], 1 }

</bundles_post_ra>
